<compile_context>
chip_gen: v6e
topology: v6e:2x2x1
jax: 0.10.0
libtpu: 0.0.40
codegen_flags: <defaults>
</compile_context>

<pallas_src>
import jax
import jax.numpy as jnp
from jax.experimental import pallas as pl
from jax.experimental.pallas import tpu as pltpu


def _posenc_kernel(x_ref, w_ref, o_ref):
    # w_ref is already tiled to the full block shape -> one unmasked vadd/vst.
    o_ref[...] = x_ref[...] + w_ref[...]


def _tpu_caps():
    """(vmem_capacity_bytes, num_tensorcores_per_chip) with safe fallbacks."""
    vmem_bytes = 128 * 1024 * 1024
    num_tc = 1
    try:
        info = pltpu.get_tpu_info()
        vmem_bytes = int(getattr(info, "vmem_capacity_bytes", vmem_bytes))
    except Exception:
        pass  # capability probe only; never wraps kernel execution
    try:
        kind = jax.devices()[0].device_kind.lower()
        if "v7" in kind:
            num_tc = 2
            vmem_bytes = min(vmem_bytes, 64 * 1024 * 1024)
    except Exception:
        pass
    return vmem_bytes, num_tc


def _choose_batches_per_block(N, group_rows, lane, itemsize, *, min_sublane,
                              max_block_bytes, prefer_multi_step):
    """How many batches each grid step processes (block = bpb*group_rows x lane)."""
    divisors = [d for d in range(1, N + 1) if N % d == 0]
    total_rows = N * group_rows

    def sublane_ok(d):
        rows = d * group_rows
        return rows % min_sublane == 0 or rows == total_rows

    def block_bytes(d):
        return d * group_rows * lane * itemsize

    ok = [d for d in divisors if sublane_ok(d)]
    fit = [d for d in ok if block_bytes(d) <= max_block_bytes]
    if fit:
        cands = fit
    elif ok:
        cands = [min(ok)]  # nothing fits the budget: smallest legal block
    else:
        cands = [N]        # full-extent block is always a legal layout

    if prefer_multi_step:
        # v7x: feed both TensorCores — >=2 grid steps, balanced (even) count,
        # but only while each block stays on the HBM roofline (>= ~2 MiB).
        multi = [d for d in cands
                 if (N // d) >= 2 and (N // d) % 2 == 0
                 and block_bytes(d) >= 2 * 1024 * 1024]
        if multi:
            return max(multi)
    return max(cands)


def pos_enc(x, weight):
    """x: (N, C, H, W), weight: (1, C, H, W). Returns x + weight (broadcast over N)."""
    N, C, H, W = x.shape
    assert weight.shape == (1, C, H, W), "weight must broadcast over batch only"
    L = H * W
    itemsize = jnp.dtype(x.dtype).itemsize

    # Pick a lane-dense flatten (last dim a multiple of 128) -> unmasked stores.
    pad_lanes = 0
    if L % 128 == 0:
        group_rows, lane = C, L
        x2 = x.reshape(N * C, L)
        w_base = weight.reshape(C, L)
    elif (C * L) % 128 == 0:
        group_rows, lane = 1, C * L
        x2 = x.reshape(N, C * L)
        w_base = weight.reshape(1, C * L)
    else:
        lane = 128 * pl.cdiv(L, 128)
        pad_lanes = lane - L
        group_rows = C
        x2 = jnp.pad(x.reshape(N * C, L), ((0, 0), (0, pad_lanes)))
        w_base = jnp.pad(weight.reshape(C, L), ((0, 0), (0, pad_lanes)))

    vmem_cap, num_tc = _tpu_caps()
    # Live VMEM ~= 2 x-in + 2 out + 2 weight buffers = 6 blocks; target <=~40% of VMEM.
    max_block_bytes = max(512 * 1024, (2 * vmem_cap // 5) // 6)
    min_sublane = max(8, 32 // itemsize)  # 8 f32, 16 bf16, 32 int8/fp8

    bpb = _choose_batches_per_block(
        N, group_rows, lane, itemsize, min_sublane=min_sublane,
        max_block_bytes=max_block_bytes, prefer_multi_step=(num_tc >= 2))

    rows_per_block = bpb * group_rows
    total_rows = N * group_rows
    grid = (N // bpb,)

    # Pre-broadcast the weight to exactly one block; constant index_map means it
    # is DMA'd once and stays resident (footprint == one x block, budgeted above).
    # Note: for extremely large C*H*W a second (lane) grid axis would bound this
    # further; not needed at these sizes.
    w_tiled = jnp.tile(w_base, (bpb, 1))

    block_bytes = rows_per_block * lane * itemsize
    need = 6 * block_bytes
    vmem_limit = int(min(vmem_cap, max(need + (2 << 20), 32 * 1024 * 1024)))

    cost = pl.CostEstimate(
        flops=total_rows * lane,
        transcendentals=0,
        bytes_accessed=(2 * total_rows * lane + rows_per_block * lane) * itemsize,
    )

    out = pl.pallas_call(
        _posenc_kernel,
        out_shape=jax.ShapeDtypeStruct((total_rows, lane), x.dtype),
        grid=grid,
        in_specs=[
            pl.BlockSpec((rows_per_block, lane), lambda i: (i, 0)),
            pl.BlockSpec((rows_per_block, lane), lambda i: (0, 0)),  # resident weight
        ],
        out_specs=pl.BlockSpec((rows_per_block, lane), lambda i: (i, 0)),
        compiler_params=pltpu.CompilerParams(
            dimension_semantics=("parallel",),
            vmem_limit_bytes=vmem_limit,
        ),
        cost_estimate=cost,
    )(x2, w_tiled)

    if pad_lanes:
        out = out[:, :L]
    return out.reshape(N, C, H, W)


if __name__ == "__main__":
    # Small shapes consistent with the module: x is NCHW with spatial == ks.
    N, C, ks = 2, 4, 16

    key = jax.random.PRNGKey(0)
    kx, kw = jax.random.split(key)

    x = jax.random.normal(kx, (N, C, ks, ks), dtype=jnp.float32)
    # Deterministic stand-in for nn.Parameter(torch.randn(1, C, ks, ks)).
    weight = jax.random.normal(kw, (1, C, ks, ks), dtype=jnp.float32)

    y = jax.block_until_ready(pos_enc(x, weight))

    # Correctness check against the plain-JAX reference (x + weight broadcast).
    ref = x + weight
    assert y.shape == (N, C, ks, ks)
    assert jnp.allclose(y, ref, atol=1e-6, rtol=1e-6)

    print("KERNEL_OK")
</pallas_src>

<mosaic_0001>
module attributes {stable_mosaic.version = 11 : i64} {
  func.func @_posenc_kernel(%arg0: i32, %arg1: memref<8x256xf32, #tpu.memory_space<vmem>>, %arg2: memref<8x256xf32, #tpu.memory_space<vmem>>, %arg3: memref<8x256xf32, #tpu.memory_space<vmem>>) attributes {dimension_semantics = [#tpu.dimension_semantics<parallel>], iteration_bounds = array<i64: 1>, scalar_prefetch = 0 : i64, scratch_operands = 0 : i64, tpu.core_type = #tpu.core_type<tc>, window_params = [{transform_indices = @transform_0, window_bounds = array<i64: 8, 256>}, {pipeline_mode = #tpu.pipeline_mode<synchronous>, transform_indices = @transform_1, window_bounds = array<i64: 8, 256>}, {transform_indices = @transform_2, window_bounds = array<i64: 8, 256>}]} {
    %c0 = arith.constant 0 : index
    %c0_0 = arith.constant 0 : index
    %0 = vector.load %arg1[%c0, %c0_0] : memref<8x256xf32, #tpu.memory_space<vmem>>, vector<8x256xf32>
    %c0_1 = arith.constant 0 : index
    %c0_2 = arith.constant 0 : index
    %1 = vector.load %arg2[%c0_1, %c0_2] : memref<8x256xf32, #tpu.memory_space<vmem>>, vector<8x256xf32>
    %2 = arith.addf %0, %1 : vector<8x256xf32>
    %c0_3 = arith.constant 0 : index
    %c0_4 = arith.constant 0 : index
    %3 = vector.load %arg3[%c0_3, %c0_4] : memref<8x256xf32, #tpu.memory_space<vmem>>, vector<8x256xf32>
    tpu.vector_store %arg3[%c0_3, %c0_4], %2 {strides = array<i32>} : memref<8x256xf32, #tpu.memory_space<vmem>>, vector<8x256xf32>,
    return
  }
  func.func @transform_0(%arg0: i32) -> (i32, i32) {
    %c0_i32 = arith.constant 0 : i32
    %c0_i32_0 = arith.constant 0 : i32
    return %arg0, %c0_i32 : i32, i32
  }
  func.func @transform_1(%arg0: i32) -> (i32, i32) {
    %c0_i32 = arith.constant 0 : i32
    %c0_i32_0 = arith.constant 0 : i32
    %c0_i32_1 = arith.constant 0 : i32
    return %c0_i32, %c0_i32_0 : i32, i32
  }
  func.func @transform_2(%arg0: i32) -> (i32, i32) {
    %c0_i32 = arith.constant 0 : i32
    %c0_i32_0 = arith.constant 0 : i32
    return %arg0, %c0_i32 : i32, i32
  }
}

</mosaic_0001>

<bundles_post_ra>
// kernel: tpu_custom_call.1
= control target key start
LH: loop header
LB: loop body
LE: loop exit
PB: predicated region body
PF: predicated region fallthrough
CT: control target
= control target key end

     0   :  { %7 = vsyncpa [#allocation3], 0  ;;  %s156_s0 = inlined_call_operand.hbm [shape: f32[8,256], index: 0, kind: input, shape index: {}]   ;;  %s157_s1 = inlined_call_operand.hbm [shape: f32[8,256], index: 1, kind: input, shape index: {}]   ;;  %s158_s2 = inlined_call_operand.hbm [shape: f32[8,256], index: 2, kind: output, shape index: {}]  }
   0x1   :  { %8 = vsyncpa [#allocation6], 0 }
   0x2   :  { %9 = vsyncpa [#allocation4], 0  ;;  %s129_s9 = smov [#allocation2]   ;;  %s130_s11 = smov [#allocation5]  }
   0x3   :  { %s16_s10 = sshll.u32 %s129_s9, 4  ;;  %s26_s12 = sshll.u32 %s130_s11, 4  ;;  %s17_s10 = int_to_ptr.vmem [resolvable:$true] %s16_s10  ;;  %s27_s12 = int_to_ptr.vmem [resolvable:$true] %s26_s12 }
   0x4   :  { %s71_s13 = scalar_lea.vmem %s17_s10, 256  ;;  %p76_p1 = scmp.lt.s32.totalorder %s17_s10, %s17_s10 }
   0x5   :  { %p72_p0 = scmp.ne.s32.totalorder %s17_s10, %s71_s13  ;;  %p77_p2 = scmp.lt.s32.totalorder %s71_s13, %s71_s13 }
   0x7   :  { %p78_p3 = por %p77_p2, %p76_p1 }
   0x9   :  { %p79_p4 = pnand %p78_p3, %p72_p0 }
   0xb   :  { %82 = shalt.err (!%p79_p4)
}
   0xc   :  { %19 = dma.hbm_to_vmem [thread:$0]  %s156_s0, 256, %s17_s10, [#allocation3]  }
   0xd   :  { %s91_s16 = scalar_lea.vmem %s27_s12, 256  ;;  %p96_p6 = scmp.lt.s32.totalorder %s27_s12, %s27_s12 }
   0xe   :  { %p92_p5 = scmp.ne.s32.totalorder %s27_s12, %s91_s16  ;;  %p97_p7 = scmp.lt.s32.totalorder %s91_s16, %s91_s16 }
  0x10   :  { %p98_p8 = por %p97_p7, %p96_p6 }
  0x12   :  { %p99_p9 = pnand %p98_p8, %p92_p5 }
  0x14   :  { %102 = shalt.err (!%p99_p9)
}
  0x15   :  { %29 = dma.hbm_to_vmem [thread:$0]  %s157_s1, 256, %s27_s12, [#allocation6]  }
  0x16   :  { %123 = dma.done.wait [#allocation3], 256  }
  0x17   :  { %124 = vsyncadd [#allocation3], 4294967040 }
  0x18   :  { %125 = dma.done.wait [#allocation6], 256  }
  0x19   :  { %126 = vsyncadd [#allocation6], 4294967040  ;;  %s131_s19 = smov [#allocation7]   ;;  %v36_v0 = vld [vmem:[#allocation2] sm:$0xff]  ;;  %v38_v1 = vld [vmem:[#allocation5] sm:$0xff] }
  0x1a   :  { %s50_s20 = sshll.u32 %s131_s19, 4  ;;  %v37_v2 = vld [vmem:[#allocation2 + $0x8] sm:$0xff]  ;;  %v40_v3 = vadd.f32 %v38_v1, %v36_v0  ;;  %v39_v4 = vld [vmem:[#allocation5 + $0x8] sm:$0xff]  ;;  %s51_s20 = int_to_ptr.vmem [resolvable:$true] %s50_s20 }
  0x1b   :  { %v41_v5 = vadd.f32 %v39_v4, %v37_v2  ;;  %s103_s0 = scalar_lea.vmem %s51_s20, 256  ;;  %p108_p11 = scmp.lt.s32.totalorder %s51_s20, %s51_s20 }
  0x1c   :  { %42 = vst [vmem:[#allocation7] sm:$0xff] %v40_v3  ;;  %p104_p10 = scmp.ne.s32.totalorder %s51_s20, %s103_s0  ;;  %p109_p12 = scmp.lt.s32.totalorder %s103_s0, %s103_s0 }
  0x1d   :  { %43 = vst [vmem:[#allocation7 + $0x8] sm:$0xff] %v41_v5 }
  0x1e   :  { %p110_p13 = por %p109_p12, %p108_p11 }
  0x20   :  { %p111_p0 = pnand %p110_p13, %p104_p10 }
  0x22   :  { %114 = shalt.err (!%p111_p0)
}
  0x23   :  { %53 = dma.vmem_to_hbm [thread:$0]  %s51_s20, 256, %s158_s2, [#allocation4]  }
  0x24   :  { %127 = dma.done.wait [#allocation4], 256  }
  0x25   :  { %128 = vsyncadd [#allocation4], 4294967040 }
  0x26   :  { %57 = vsyncpa [#allocation3], 1 }
  0x27   :  { %58 = vsyncpa [#allocation6], 1 }
  0x28   :  { %59 = vsyncpa [#allocation4], 1 }

</bundles_post_ra>
